<compile_context>
chip_gen: v7x
topology: tpu7x:2x2x1
jax: 0.10.0
libtpu: 0.0.40
codegen_flags: <defaults>
</compile_context>

<pallas_src>
import math
from functools import partial

import jax
import jax.numpy as jnp
from jax.experimental import pallas as pl
from jax.experimental.pallas import tpu as pltpu


def _pick_tile(dim, align, target):
    """Tile size for one trailing block dim: full extent when small (always a
    legal block shape), otherwise the largest multiple of `align` <= `target`
    that divides `dim`; as a last resort a non-dividing multiple of `align`
    (Pallas masks the ragged edge blocks)."""
    if dim <= target:
        return dim
    t = (target // align) * align
    while t >= align:
        if dim % t == 0:
            return t
        t -= align
    return (target // align) * align


def _simplify(x, perm):
    """Drop unit dims and merge runs of dims that stay contiguous (same order)
    in both input and output.  Returns (x_reshaped, new_perm); the reshape is
    metadata-only.  Maximizes trailing block size / lane density."""
    shape = tuple(x.shape)
    perm = tuple(perm)
    keep = [d for d in range(len(shape)) if shape[d] != 1]
    if not keep:
        return x.reshape(()), ()
    remap = {d: i for i, d in enumerate(keep)}
    shape = tuple(shape[d] for d in keep)
    perm = tuple(remap[p] for p in perm if p in remap)

    groups = []                      # runs of input dims, in OUTPUT order
    for p in perm:
        if groups and p == groups[-1][-1] + 1:
            groups[-1].append(p)
        else:
            groups.append([p])
    order = sorted(range(len(groups)), key=lambda i: groups[i][0])
    new_shape = tuple(math.prod(shape[d] for d in groups[i]) for i in order)
    rank = {gi: r for r, gi in enumerate(order)}
    new_perm = tuple(rank[k] for k in range(len(groups)))
    return x.reshape(new_shape), new_perm


def _transpose_pass(x, perm):
    """One pallas_call realising a permutation whose (coalesced) trailing two
    dims map onto the output's trailing two dims (possibly swapped), while the
    leading dims are re-indexed purely through BlockSpec index maps.  The
    trailing 2-D slab is tiled with 128-aligned blocks."""
    n = x.ndim
    assert n >= 2 and set(perm[-2:]) == {n - 2, n - 1}, perm
    swap = perm[-1] == n - 2
    lead = n - 2
    out_shape = tuple(x.shape[p] for p in perm)
    P, Q = x.shape[-2], x.shape[-1]
    itemsize = jnp.dtype(x.dtype).itemsize

    if swap:
        # Both tile dims become a lane dim on one side -> 128-aligned tiles (or
        # full extent) keep the XLU transpose on whole vregs and stores
        # unmasked.  512x512 f32 ~ 1 MiB per block.
        tp = _pick_tile(P, 128, 512)
        tq = _pick_tile(Q, 128, 512)
    else:
        # Pure leading re-index: lane dim as wide as possible, sublane dim at
        # the packed-dtype minimum (8 f32 / 16 bf16 / 32 int8 rows).
        sub = max(8, 32 // itemsize)
        tq = _pick_tile(Q, 128, 4096)
        tp = _pick_tile(P, sub, max(sub, (2 << 20) // max(1, tq * itemsize)))

    gp, gq = pl.cdiv(P, tp), pl.cdiv(Q, tq)
    grid = tuple(out_shape[:lead]) + (gp, gq)

    inv = [0] * n
    for k, p in enumerate(perm):
        inv[p] = k

    def in_index_map(*g):
        # output leading coordinate g[k] indexes input dim perm[k]
        return tuple(g[inv[j]] for j in range(lead)) + (g[lead], g[lead + 1])

    if swap:
        def out_index_map(*g):
            return tuple(g[:lead]) + (g[lead + 1], g[lead])
        out_block = (None,) * lead + (tq, tp)
    else:
        def out_index_map(*g):
            return tuple(g[:lead]) + (g[lead], g[lead + 1])
        out_block = (None,) * lead + (tp, tq)

    in_block = (None,) * lead + (tp, tq)

    def kernel(x_ref, o_ref):
        t = x_ref[...]                     # 2-D tile (leading dims squeezed)
        o_ref[...] = t.T if swap else t    # minor 2-D transpose runs on the XLU

    return pl.pallas_call(
        kernel,
        out_shape=jax.ShapeDtypeStruct(out_shape, x.dtype),
        grid=grid,
        in_specs=[pl.BlockSpec(in_block, in_index_map)],
        out_specs=pl.BlockSpec(out_block, out_index_map),
        compiler_params=pltpu.CompilerParams(
            # each output block is written exactly once -> fully parallel grid,
            # so v7x can shard the loop across both TensorCores.
            dimension_semantics=("parallel",) * len(grid),
            # headroom above the v5e 16 MiB scoped default; blocks are capped
            # at ~2 MiB so this also fits v7x's 64 MiB physical VMEM.
            vmem_limit_bytes=32 * 1024 * 1024),
    )(x)


def _choose_pre(p):
    """For a coalesced permutation that is NOT realisable in one pass, pick a
    first-pass permutation `pre` (itself one pass after coalescing) such that
    the remainder needs as few further passes as possible:
      (i)  the two original trailing dims sit adjacent somewhere in p
           -> remainder coalesces to a single flat 2-D transpose (2 passes),
      (ii) the last output dim is one of the original trailing dims
           -> remainder coalesces to a (lead, P, Q)->(lead, Q, P) swap (2),
      else a rotation that makes the remainder satisfy (ii) (3 passes)."""
    n = len(p)
    pos = {d: i for i, d in enumerate(p)}
    i2, i1 = pos[n - 2], pos[n - 1]
    if abs(i2 - i1) == 1:                                   # (i)
        j = min(i2, i1)
        return tuple(p[j + 2:]) + tuple(p[:j]) + (p[j], p[j + 1])
    if p[-1] in (n - 2, n - 1):                             # (ii)
        o = (n - 2) + (n - 1) - p[-1]
        j = pos[o]
        return tuple(p[:j]) + tuple(p[j + 1:]) + (o,)
    b = p[-1]                                               # fallback
    return tuple(range(b)) + tuple(range(b + 1, n)) + (b,)


def pallas_permute(x, perm, _depth=0):
    """General N-D permute built from at most three Pallas passes.  All actual
    data movement happens inside pallas_call; the reshape glue between passes
    only reinterprets the flat HBM layout."""
    perm = tuple(int(p) for p in perm)
    assert sorted(perm) == list(range(x.ndim)), perm
    if _depth > 4:   # the decomposition above terminates in <= 3 passes
        raise AssertionError("permutation decomposition did not terminate")
    out_shape = tuple(x.shape[p] for p in perm)
    x2, p2 = _simplify(x, perm)
    m = len(p2)
    if m <= 1 or p2 == tuple(range(m)):
        return x2.reshape(out_shape)        # pure relabeling, no data movement
    if set(p2[-2:]) == {m - 2, m - 1}:      # one pass
        return _transpose_pass(x2, p2).reshape(out_shape)
    pre = _choose_pre(p2)                   # two (rarely three) passes
    y = pallas_permute(x2, pre, _depth + 1)
    rem = tuple(pre.index(q) for q in p2)
    return pallas_permute(y, rem, _depth + 1).reshape(out_shape)


@partial(jax.jit, static_argnames=("perm",))
def _permute_jit(x, perm):
    # perm is decomposed once at trace time; all passes of one array live in a
    # single jit so XLA elides the metadata reshapes between pallas_calls.
    return pallas_permute(x, perm)


class ZonoOnnxTranspose:
    """JAX/Pallas equivalent of abZono's ZonoOnnxTranspose.

    perm=None defaults to reversed dims of the current input, computed per call
    (the original module caches it on first use, which silently breaks if the
    layer is reused on a different rank; outputs are identical for the normal
    single-rank use)."""

    def __init__(self, perm=None):
        self.perm = list(perm) if perm is not None else None
        self.__name__ = "ZonoOnnxTranspose"

    def __call__(self, center, generators):
        perm = self.perm if self.perm is not None else list(range(center.ndim))[::-1]
        perm = tuple(int(p) for p in perm)
        gen_perm = (0,) + tuple(p + 1 for p in perm)
        return _permute_jit(center, perm), _permute_jit(generators, gen_perm)


if __name__ == "__main__":
    key = jax.random.PRNGKey(0)
    k1, k2 = jax.random.split(key)
    # Zonotope over an NCHW activation: center (B,C,H,W), generators (E,B,C,H,W)
    B, C, H, W, E = 2, 8, 16, 16, 3
    center = jax.random.normal(k1, (B, C, H, W), dtype=jnp.float32)
    generators = jax.random.normal(k2, (E, B, C, H, W), dtype=jnp.float32)

    ok = True
    # module default (reversed dims), NCHW->NHWC, H<->W swap, and a perm that
    # exercises the 3-pass fallback path.
    for perm in (None, [0, 2, 3, 1], [0, 1, 3, 2], [2, 0, 3, 1]):
        layer = ZonoOnnxTranspose(perm)
        c_out, g_out = layer(center, generators)
        jax.block_until_ready((c_out, g_out))
        p = list(perm) if perm is not None else list(range(center.ndim))[::-1]
        gp = [0] + [q + 1 for q in p]
        c_ref = jnp.transpose(center, p)
        g_ref = jnp.transpose(generators, gp)
        ok &= bool(jnp.array_equal(c_out, c_ref))
        ok &= bool(jnp.array_equal(g_out, g_ref))

    # plain 2-D matrix transpose (rank-2 path, no leading grid dims)
    m = jax.random.normal(k1, (8, 32), dtype=jnp.float32)
    ok &= bool(jnp.array_equal(_permute_jit(m, (1, 0)), m.T))

    if ok:
        print("KERNEL_OK")
    else:
        raise SystemExit("zono transpose mismatch")
</pallas_src>

<mosaic_0001>
module attributes {stable_mosaic.version = 11 : i64} {
  func.func @kernel(%arg0: i32, %arg1: i32, %arg2: memref<16x256xf32, #tpu.memory_space<vmem>>, %arg3: memref<256x16xf32, #tpu.memory_space<vmem>>) attributes {dimension_semantics = [#tpu.dimension_semantics<parallel>, #tpu.dimension_semantics<parallel>], iteration_bounds = array<i64: 1, 1>, scalar_prefetch = 0 : i64, scratch_operands = 0 : i64, tpu.core_type = #tpu.core_type<tc>, window_params = [{transform_indices = @transform_0, window_bounds = array<i64: 16, 256>}, {transform_indices = @transform_1, window_bounds = array<i64: 256, 16>}]} {
    %c0 = arith.constant 0 : index
    %c0_0 = arith.constant 0 : index
    %0 = vector.load %arg2[%c0, %c0_0] : memref<16x256xf32, #tpu.memory_space<vmem>>, vector<16x256xf32>
    %1 = tpu.transpose %0, [1, 0] : vector<16x256xf32> -> vector<256x16xf32>
    %c0_1 = arith.constant 0 : index
    %c0_2 = arith.constant 0 : index
    %2 = vector.load %arg3[%c0_1, %c0_2] : memref<256x16xf32, #tpu.memory_space<vmem>>, vector<256x16xf32>
    tpu.vector_store %arg3[%c0_1, %c0_2], %1 {strides = array<i32>} : memref<256x16xf32, #tpu.memory_space<vmem>>, vector<256x16xf32>,
    return
  }
  func.func @transform_0(%arg0: i32, %arg1: i32) -> (i32, i32) {
    %c0_i32 = arith.constant 0 : i32
    return %arg0, %arg1 : i32, i32
  }
  func.func @transform_1(%arg0: i32, %arg1: i32) -> (i32, i32) {
    %c0_i32 = arith.constant 0 : i32
    return %arg1, %arg0 : i32, i32
  }
}

module attributes {stable_mosaic.version = 11 : i64} {
  func.func @kernel(%arg0: i32, %arg1: i32, %arg2: i32, %arg3: i32, %arg4: memref<1x1x16x16xf32, #tpu.memory_space<vmem>>, %arg5: memref<1x1x16x16xf32, #tpu.memory_space<vmem>>) attributes {dimension_semantics = [#tpu.dimension_semantics<parallel>, #tpu.dimension_semantics<parallel>, #tpu.dimension_semantics<parallel>, #tpu.dimension_semantics<parallel>], iteration_bounds = array<i64: 8, 2, 1, 1>, scalar_prefetch = 0 : i64, scratch_operands = 0 : i64, tpu.core_type = #tpu.core_type<tc>, window_params = [{transform_indices = @transform_0, window_bounds = array<i64: 1, 1, 16, 16>}, {transform_indices = @transform_1, window_bounds = array<i64: 1, 1, 16, 16>}]} {
    %c0 = arith.constant 0 : index
    %c0_0 = arith.constant 0 : index
    %c0_1 = arith.constant 0 : index
    %c0_2 = arith.constant 0 : index
    %0 = vector.load %arg4[%c0, %c0_0, %c0_1, %c0_2] : memref<1x1x16x16xf32, #tpu.memory_space<vmem>>, vector<1x1x16x16xf32>
    %1 = vector.shape_cast %0 : vector<1x1x16x16xf32> to vector<16x16xf32>
    %2 = tpu.transpose %1, [1, 0] : vector<16x16xf32> -> vector<16x16xf32>
    %c0_3 = arith.constant 0 : index
    %c0_4 = arith.constant 0 : index
    %c0_5 = arith.constant 0 : index
    %c0_6 = arith.constant 0 : index
    %3 = vector.load %arg5[%c0_3, %c0_4, %c0_5, %c0_6] : memref<1x1x16x16xf32, #tpu.memory_space<vmem>>, vector<1x1x16x16xf32>
    %4 = vector.shape_cast %3 : vector<1x1x16x16xf32> to vector<16x16xf32>
    %5 = vector.shape_cast %2 : vector<16x16xf32> to vector<1x1x16x16xf32>
    tpu.vector_store %arg5[%c0_3, %c0_4, %c0_5, %c0_6], %5 {strides = array<i32>} : memref<1x1x16x16xf32, #tpu.memory_space<vmem>>, vector<1x1x16x16xf32>,
    return
  }
  func.func @transform_0(%arg0: i32, %arg1: i32, %arg2: i32, %arg3: i32) -> (i32, i32, i32, i32) {
    %c0_i32 = arith.constant 0 : i32
    return %arg1, %arg0, %arg2, %arg3 : i32, i32, i32, i32
  }
  func.func @transform_1(%arg0: i32, %arg1: i32, %arg2: i32, %arg3: i32) -> (i32, i32, i32, i32) {
    %c0_i32 = arith.constant 0 : i32
    return %arg0, %arg1, %arg3, %arg2 : i32, i32, i32, i32
  }
}

</mosaic_0001>

<bundles_post_ra>
// kernel: _permute_jit.3
= control target key start
LH: loop header
LB: loop body
LE: loop exit
PB: predicated region body
PF: predicated region fallthrough
CT: control target
= control target key end

     0   :  { %vm76_vm0 = vcmask 130048   ;;  %s264_s0 = inlined_call_operand.vmem [shape: f32[16,256], index: 0, kind: input, shape index: {}]   ;;  %s265_s1 = inlined_call_operand.vmem [shape: f32[256,16], index: 1, kind: output, shape index: {}]  }
   0x1   :  { %v9_v0 = vld [vmem:[%s264_s0 + $0x8] sm:$0xff]  ;;  %v8_v1 = vld [vmem:[%s264_s0] sm:$0xff]  ;;  %v11_v2 = vld [vmem:[%s264_s0 + $0x18] sm:$0xff] }
   0x2   :  { %44 = vxpose.xlu1.b32.start [1/2] (short) %v9_v0, 128  ;;  %12 = vxpose.xlu0.b32.start [1/2] (short) %v8_v1, 128  ;;  %v10_v3 = vld [vmem:[%s264_s0 + $0x10] sm:$0xff] }
   0x6   :  { %45 = vxpose.xlu1.b32.end [2/2] (short) %v11_v2, 128  ;;  %13 = vxpose.xlu0.b32.end [2/2] (short) %v10_v3, 128 }
  0x82   :  { %v60_v4 = vpop.trf.xlu1  ;;  %v28_v5 = vpop.trf.xlu0 }
  0x83   :  { %93 = vst.msk [vmem:[%s265_s1 + $0x80] sm:$0xff] %vm76_vm0, %v60_v4  ;;  %77 = vst.msk [vmem:[%s265_s1] sm:$0xff] %vm76_vm0, %v28_v5 }
  0x86   :  { %v61_v6 = vpop.trf.xlu1  ;;  %v29_v7 = vpop.trf.xlu0 }
  0x87   :  { %94 = vst.msk [vmem:[%s265_s1 + $0x88] sm:$0xff] %vm76_vm0, %v61_v6  ;;  %78 = vst.msk [vmem:[%s265_s1 + $0x8] sm:$0xff] %vm76_vm0, %v29_v7 }
  0x8a   :  { %v62_v8 = vpop.trf.xlu1  ;;  %v30_v9 = vpop.trf.xlu0 }
  0x8b   :  { %95 = vst.msk [vmem:[%s265_s1 + $0x90] sm:$0xff] %vm76_vm0, %v62_v8  ;;  %79 = vst.msk [vmem:[%s265_s1 + $0x10] sm:$0xff] %vm76_vm0, %v30_v9 }
  0x8e   :  { %v63_v10 = vpop.trf.xlu1  ;;  %v31_v11 = vpop.trf.xlu0 }
  0x8f   :  { %96 = vst.msk [vmem:[%s265_s1 + $0x98] sm:$0xff] %vm76_vm0, %v63_v10  ;;  %80 = vst.msk [vmem:[%s265_s1 + $0x18] sm:$0xff] %vm76_vm0, %v31_v11 }
  0x92   :  { %v64_v12 = vpop.trf.xlu1  ;;  %v32_v13 = vpop.trf.xlu0 }
  0x93   :  { %97 = vst.msk [vmem:[%s265_s1 + $0xa0] sm:$0xff] %vm76_vm0, %v64_v12  ;;  %81 = vst.msk [vmem:[%s265_s1 + $0x20] sm:$0xff] %vm76_vm0, %v32_v13 }
  0x96   :  { %v65_v14 = vpop.trf.xlu1  ;;  %v33_v15 = vpop.trf.xlu0 }
  0x97   :  { %98 = vst.msk [vmem:[%s265_s1 + $0xa8] sm:$0xff] %vm76_vm0, %v65_v14  ;;  %82 = vst.msk [vmem:[%s265_s1 + $0x28] sm:$0xff] %vm76_vm0, %v33_v15 }
  0x9a   :  { %v66_v16 = vpop.trf.xlu1  ;;  %v34_v17 = vpop.trf.xlu0 }
  0x9b   :  { %99 = vst.msk [vmem:[%s265_s1 + $0xb0] sm:$0xff] %vm76_vm0, %v66_v16  ;;  %83 = vst.msk [vmem:[%s265_s1 + $0x30] sm:$0xff] %vm76_vm0, %v34_v17 }
  0x9e   :  { %v67_v18 = vpop.trf.xlu1  ;;  %v35_v19 = vpop.trf.xlu0 }
  0x9f   :  { %100 = vst.msk [vmem:[%s265_s1 + $0xb8] sm:$0xff] %vm76_vm0, %v67_v18  ;;  %84 = vst.msk [vmem:[%s265_s1 + $0x38] sm:$0xff] %vm76_vm0, %v35_v19 }
  0xa2   :  { %v68_v20 = vpop.trf.xlu1  ;;  %v36_v21 = vpop.trf.xlu0 }
  0xa3   :  { %101 = vst.msk [vmem:[%s265_s1 + $0xc0] sm:$0xff] %vm76_vm0, %v68_v20  ;;  %85 = vst.msk [vmem:[%s265_s1 + $0x40] sm:$0xff] %vm76_vm0, %v36_v21 }
  0xa6   :  { %v69_v22 = vpop.trf.xlu1  ;;  %v37_v23 = vpop.trf.xlu0 }
  0xa7   :  { %102 = vst.msk [vmem:[%s265_s1 + $0xc8] sm:$0xff] %vm76_vm0, %v69_v22  ;;  %86 = vst.msk [vmem:[%s265_s1 + $0x48] sm:$0xff] %vm76_vm0, %v37_v23 }
  0xaa   :  { %v70_v24 = vpop.trf.xlu1  ;;  %v38_v25 = vpop.trf.xlu0 }
  0xab   :  { %103 = vst.msk [vmem:[%s265_s1 + $0xd0] sm:$0xff] %vm76_vm0, %v70_v24  ;;  %87 = vst.msk [vmem:[%s265_s1 + $0x50] sm:$0xff] %vm76_vm0, %v38_v25 }
  0xae   :  { %v71_v26 = vpop.trf.xlu1  ;;  %v39_v27 = vpop.trf.xlu0 }
  0xaf   :  { %104 = vst.msk [vmem:[%s265_s1 + $0xd8] sm:$0xff] %vm76_vm0, %v71_v26  ;;  %88 = vst.msk [vmem:[%s265_s1 + $0x58] sm:$0xff] %vm76_vm0, %v39_v27 }
  0xb2   :  { %v72_v28 = vpop.trf.xlu1  ;;  %v40_v29 = vpop.trf.xlu0 }
  0xb3   :  { %105 = vst.msk [vmem:[%s265_s1 + $0xe0] sm:$0xff] %vm76_vm0, %v72_v28  ;;  %89 = vst.msk [vmem:[%s265_s1 + $0x60] sm:$0xff] %vm76_vm0, %v40_v29 }
  0xb6   :  { %v73_v30 = vpop.trf.xlu1  ;;  %v41_v31 = vpop.trf.xlu0 }
  0xb7   :  { %106 = vst.msk [vmem:[%s265_s1 + $0xe8] sm:$0xff] %vm76_vm0, %v73_v30  ;;  %90 = vst.msk [vmem:[%s265_s1 + $0x68] sm:$0xff] %vm76_vm0, %v41_v31 }
  0xba   :  { %v74_v32 = vpop.trf.xlu1  ;;  %v42_v33 = vpop.trf.xlu0 }
  0xbb   :  { %107 = vst.msk [vmem:[%s265_s1 + $0xf0] sm:$0xff] %vm76_vm0, %v74_v32  ;;  %91 = vst.msk [vmem:[%s265_s1 + $0x70] sm:$0xff] %vm76_vm0, %v42_v33 }
  0xbe   :  { %v75_v34 = vpop.trf.xlu1  ;;  %v43_v35 = vpop.trf.xlu0 }
  0xbf   :  { %108 = vst.msk [vmem:[%s265_s1 + $0xf8] sm:$0xff] %vm76_vm0, %v75_v34  ;;  %92 = vst.msk [vmem:[%s265_s1 + $0x78] sm:$0xff] %vm76_vm0, %v43_v35 }

// kernel: _permute_jit.2
= control target key start
LH: loop header
LB: loop body
LE: loop exit
PB: predicated region body
PF: predicated region fallthrough
CT: control target
= control target key end

     0   :  { %6 = vsyncpa [#allocation3], 0  ;;  %s727_s0 = inlined_call_operand.hbm [shape: f32[2,8,16,16], index: 0, kind: input, shape index: {}]   ;;  %s728_s1 = inlined_call_operand.vmem [shape: f32[8,2,16,16], index: 1, kind: output, shape index: {}]  }
   0x1   :  { %8 = vsyncpa [#allocation3 + $0x1], 0  ;;  %s574_s6 = smov 0   ;;  %s576_s7 = smov 0  }
   0x2   :  { %s578_s8 = smov 0   ;;  %s580_s9 = smov 0  }
   0x3   :  { %s582_s10 = smov 0   ;;  %s584_s11 = smov 0  }
   0x4   :  { %s586_s12 = smov 0   ;;  %s588_s13 = smov 0  }
   0x5 LB: > { %s374_s14 = sadd.s32 4294967295, %s559_s13   ;;  %s36_s15 = sadd.s32 1, %s551_s11  ;;  %s559_s13 = sphi %s588_s13, %s14_s13   ;;  %s555_s12 = sphi %s586_s12, %s739_s12   ;;  %s551_s11 = sphi %s584_s11, %s738_s11   ;;  %s547_s10 = sphi %s582_s10, %s737_s10   ;;  %s543_s9 = sphi %s580_s9, %s736_s9   ;;  %s539_s8 = sphi %s578_s8, %s735_s8   ;;  %s535_s7 = sphi %s576_s7, %s734_s7   ;;  %s531_s6 = sphi %s574_s6, %s733_s6  }
   0x6   : > { %p38_p0 = scmp.ge.s32.totalorder %s36_s15, 2  ;;  %s40_s16 = sadd.s32 1, %s555_s12 }
   0x7   : > { %s53_s17 = sadd.s32 1, %s539_s8  ;;  %p60_p1 = scmp.ne.s32.totalorder %s539_s8, %s535_s7 }
   0x8   : > { %s741_s15 = smov (%p38_p0, %s36_s15), 0  ;;  %s743_s16 = smov (!%p38_p0, %s40_s16), %s555_s12 }
   0x9   : > { %s44_s18 = ssub.s32 %s551_s11, %s741_s15  ;;  %p61_p2 = scmp.eq.s32.totalorder %s559_s13, 0 }
   0xa   : > { %p42_p3 = scmp.ge.s32.totalorder %s743_s16, 8  ;;  %p66_p4 = scmp.ne.s32.totalorder %s535_s7, %s531_s6 }
   0xb   : > { %p625_p5 = por %p61_p2, %p60_p1  ;;  %p67_p6 = scmp.eq.s32.totalorder %s374_s14, 0 }
   0xc   : > { %s745_s16 = smov (%p42_p3, %s743_s16), 0  ;;  %p395_p8 = scmp.lt.s32.totalorder %s559_s13, 16 }
   0xd   : > { %p631_p7 = por %p67_p6, %p66_p4  ;;  %s45_s21 = ssub.s32 %s555_s12, %s745_s16 }
   0xe   : > { %s46_s22 = sor.u32 %s45_s21, %s44_s18  ;;  %s122_s23 = sand.u32 1, %s539_s8  }
   0xf   : > { %p51_p9 = scmp.eq.s32.totalorder %s46_s22, 0  ;;  %s378_s24 = sshll.u32 %s122_s23, 4 }
  0x10   : > { %s379_s25 = sshll.u32 %s555_s12, 1  ;;  %s380_s27 = sshll.u32 %s551_s11, 4 }
  0x11   : > { %s641_s26 = scalar_select %p51_p9, %s539_s8, %s53_s17  }
  0x12   : > { %s135_s28 = sadd.s32 %s380_s27, %s379_s25  ;;  %s126_s29 = scalar_lea.vmem [#allocation2], %s378_s24 }
  0x13   : > { %s138_s30 = sshll.u32 %s126_s29, 4  ;;  %s381_s2 = sshll.u32 %s135_s28, 7  ;;  %s644_s30 = int_to_ptr.vmem [resolvable:$true] %s138_s30 }
  0x14   : > { %s649_s5 = scalar_lea.hbm %s727_s0, %s381_s2  ;;  %p655_p10 = pnand %p395_p8, %p625_p5 }
  0x15   : > { %s660_s14 = scalar_lea.sflag [#allocation3], %s122_s23  ;;  %s463_s17 = scalar_lea.hbm %s649_s5, 256 }
  0x16   : > { %p464_p12 = scmp.ne.s32.totalorder %s649_s5, %s463_s17  ;;  %p465_p13 = pneg %p655_p10 }
  0x17   : > { %s468_s21 = scalar_lea.hbm %s727_s0, 4096  ;;  %p469_p2 = scmp.lt.u32.totalorder %s649_s5, %s727_s0 }
  0x18   : > { %p466_p0 = pnand %p465_p13, %p464_p12  ;;  %p470_p3 = scmp.lt.u32.totalorder %s468_s21, %s463_s17 }
  0x19   : > { %p472_p5 = scmp.lt.u32.totalorder %s463_s17, %s649_s5 }
  0x1a   : > { %p467_p1 = pneg %p466_p0  ;;  %p471_p4 = por %p470_p3, %p469_p2 }
  0x1c   : > { %p473_p6 = por %p472_p5, %p471_p4 }
  0x1e   : > { %p474_p8 = pnand %p473_p6, %p467_p1 }
  0x20   : > { %477 = shalt.err (!%p474_p8)
}
  0x21   : > { %s478_s23 = scalar_lea.vmem %s644_s30, 256  ;;  %s561_s25 = smov [#allocation2]  }
  0x22   : > { %p479_p9 = scmp.ne.s32.totalorder %s644_s30, %s478_s23  ;;  %s483_s27 = sshll.u32 %s561_s25, 4  ;;  %s484_s27 = int_to_ptr.vmem [resolvable:$false] %s483_s27 }
  0x23   : > { %s485_s28 = scalar_lea.vmem %s484_s27, 512  ;;  %p486_p11 = scmp.lt.s32.totalorder %s644_s30, %s484_s27 }
  0x24   : > { %p481_p12 = pnand %p479_p9, %p465_p13  ;;  %p487_p2 = scmp.lt.s32.totalorder %s485_s28, %s478_s23 }
  0x26   : > { %p482_p0 = pneg %p481_p12  ;;  %p488_p3 = por %p487_p2, %p486_p11 }
  0x28   : > { %p489_p4 = pnand %p488_p3, %p482_p0 }
  0x2a   : > { %492 = shalt.err (!%p489_p4)
}
  0x2b   : > { %s562_s29 = smov 128   ;;  %s563_s2 = smov 8  }
  0x2c   : > { %394 = dma.hbm_to_vmem [thread:$0]  (!%p655_p10), %s649_s5, 256, %s644_s30, %s660_s14, %s562_s29, %s562_s29, %s563_s2  }
  0x2d   : > { %p146_p13 = scmp.lt.s32.totalorder %s559_s13, 17  ;;  %p732_p1 = scmp.ge.s32.totalorder %s559_s13, 1 }
  0x2f   : > { %p147_p5 = pnand %p732_p1, %p146_p13 }
  0x30   : > { %s152_s3 = sand.u32 (!%p147_p5), 1, %s535_s7  }
  0x31   : > { %150 = sbr.rel (%p147_p5) target bundleno = 192 (0xc0), region = 24  ;;  %s383_s4 = sshll.u32 (!%p147_p5), %s152_s3, 4 }
  0x32   : > { %s153_s17 = scalar_lea.sflag (!%p147_p5), [#allocation3], %s152_s3  ;;  %s156_s18 = scalar_lea.vmem (!%p147_p5), [#allocation2], %s383_s4 }
  0x38   : > { %526 = dma.done.wait (%p631_p7), %s153_s17, 256  }
  0x39   : > { %528 = vsyncadd (%p631_p7), %s153_s17, 4294967040  ;;  %v204_v0 = vld [vmem:[%s156_s18] sm:$0xff]  ;;  %v205_v1 = vld [vmem:[%s156_s18 + $0x8] sm:$0xff]  ;;  %p188_p10 = scmp.lt.s32.totalorder %s547_s10, 7  ;;  %p190_p11 = scmp.lt.s32.totalorder %s543_s9, 1  ;;  %vm238_vm0 = vcmask 130048  }
  0x3a   : > { %206 = vxpose.xlu0.b32.start [1/2] (short) (narrow) %v204_v0, 16 }
  0x3b   : > { %s747_s10 = smov (!%p188_p10, %s547_s10), 7  ;;  %s749_s9 = smov (!%p190_p11, %s543_s9), 1 }
  0x3c   : > { %s384_s30 = sshll.u32 %s749_s9, 1  ;;  %s385_s5 = sshll.u32 %s747_s10, 2 }
  0x3d   : > { %s200_s6 = sadd.s32 %s385_s5, %s384_s30 }
  0x3e   : > { %207 = vxpose.xlu0.b32.end [2/2] (short) (narrow) %v205_v1, 16  ;;  %s386_s14 = sshll.u32 %s200_s6, 3 }
  0x3f   : > { %s202_s20 = scalar_lea.vmem %s728_s1, %s386_s14 }
  0xba   : > { %v222_v2 = vpop.trf.xlu0 }
  0xbb   : > { %239 = vst.msk [vmem:[%s202_s20] sm:$0xff] %vm238_vm0, %v222_v2 }
  0xbe   : > { %v223_v3 = vpop.trf.xlu0 }
  0xbf   : > { %240 = vst.msk [vmem:[%s202_s20 + $0x8] sm:$0xff] %vm238_vm0, %v223_v3 }
  0xc0 PF: > { %s14_s13 = sadd.s32 1, %s559_s13   ;;  %s733_s6 = smov %s535_s7 }
  0xc1   : > { %p11_p7 = scmp.ge.s32.totalorder %s14_s13, 18   ;;  %s734_s7 = smov %s539_s8 }
  0xc2   : > { %s735_s8 = smov %s641_s26  ;;  %s736_s9 = smov %s551_s11 }
  0xc3   : > { %s737_s10 = smov %s555_s12  ;;  %s738_s11 = smov %s741_s15 }
  0xc4   : > { %s739_s12 = smov %s745_s16  ;;  %13 = sbr.rel (!%p11_p7) target bundleno = 5 (0x5), region = 64 }
  0xcb   :  { %285 = vsyncpa [#allocation3], 1 }
  0xcc   :  { %287 = vsyncpa [#allocation3 + $0x1], 1 }

</bundles_post_ra>
